<compile_context>
chip_gen: v7x
topology: tpu7x:2x2x1
jax: 0.10.0
libtpu: 0.0.40
codegen_flags: <defaults>
</compile_context>

<pallas_src>
import functools

import jax
import jax.numpy as jnp
from jax.experimental import pallas as pl
from jax.experimental.pallas import tpu as pltpu


# Logical / padded layer widths.
H1, H2 = 400, 300            # PyTorch hidden widths
H1P, H2P = 512, 384          # padded to lane multiples of 128
W14_COLS = 2 * H1P           # fused layer-1/4 output width (head1 | head2)
B_COLS = W14_COLS + 2 * H2P  # packed-bias width = 1792 (lane-dense)


def _critic_kernel(x_ref, u_ref, wa_ref, wb_ref, b_ref, q1_ref, q2_ref, *, in_dim):
    f32, bf16 = jnp.float32, jnp.bfloat16

    # (B, state) ++ (B, action) -> (B, in_dim); single-vreg lane concat.
    xu = jnp.concatenate([x_ref[...], u_ref[...]], axis=1).astype(bf16)

    # ---- static unpacking of the packed operands (128-aligned views) ------
    w14 = wa_ref[0:in_dim, 0:W14_COLS]           # (in_dim, 1024) bf16
    wf = wa_ref[:, W14_COLS:].astype(f32)        # rows 0/1 = w3ᵀ/w6ᵀ (+ b3/b6 at lane 383)
    w2 = wb_ref[:, 0:H2P]                        # (512, 384) bf16
    w5 = wb_ref[:, H2P:2 * H2P]                  # (512, 384) bf16
    b14 = b_ref[:, 0:W14_COLS]                   # (1, 1024) f32
    b2 = b_ref[:, W14_COLS:W14_COLS + H2P]       # (1, 384)  f32  (lane 383 == 1.0)
    b5 = b_ref[:, W14_COLS + H2P:B_COLS]         # (1, 384)  f32  (lane 383 == 1.0)

    # ---- fused layer 1 / layer 4: both heads in one MXU pass ---------------
    h = jnp.dot(xu, w14, preferred_element_type=f32) + b14
    h = jnp.maximum(h, 0.0)
    h1 = h[:, :H1P].astype(bf16)                 # head-1 activations
    h2 = h[:, H1P:].astype(bf16)                 # head-2 activations

    # ---- layer 2 / layer 5 --------------------------------------------------
    g1 = jnp.maximum(jnp.dot(h1, w2, preferred_element_type=f32) + b2, 0.0)
    g2 = jnp.maximum(jnp.dot(h2, w5, preferred_element_type=f32) + b5, 0.0)

    # ---- layer 3 / layer 6: VPU multiply + XLU lane reduce ------------------
    # (b3/b6 are carried by the exact-1.0 lane 383 of g1/g2)
    q1_ref[...] = jnp.sum(g1 * wf[0:1, :], axis=-1, keepdims=True).astype(q1_ref.dtype)
    q2_ref[...] = jnp.sum(g2 * wf[1:2, :], axis=-1, keepdims=True).astype(q2_ref.dtype)


def critic_forward(x, u, kparams):
    """Pallas implementation of Critic.forward(x, u) -> (q1, q2)."""
    batch = x.shape[0]
    in_dim = x.shape[1] + u.shape[1]
    vmem = pl.BlockSpec(memory_space=pltpu.MemorySpace.VMEM)
    kernel = functools.partial(_critic_kernel, in_dim=in_dim)
    q1, q2 = pl.pallas_call(
        kernel,
        out_shape=(jax.ShapeDtypeStruct((batch, 1), jnp.float32),
                   jax.ShapeDtypeStruct((batch, 1), jnp.float32)),
        in_specs=[vmem, vmem, vmem, vmem, vmem],
        out_specs=(vmem, vmem),
    )(x, u, kparams["w_a"], kparams["w_b"], kparams["b"])
    return q1, q2


def init_critic_params(key, state_dim, action_dim):
    """PyTorch nn.Linear-style init, U(-1/sqrt(fan_in), 1/sqrt(fan_in)).
    Weights stored as (in, out) = transpose of PyTorch layout; biases (1, out)."""
    in_dim = state_dim + action_dim
    dims = [(in_dim, H1), (H1, H2), (H2, 1),    # head 1: layers 1,2,3
            (in_dim, H1), (H1, H2), (H2, 1)]    # head 2: layers 4,5,6
    params = {}
    for i, (fan_in, fan_out) in enumerate(dims, start=1):
        key, kw, kb = jax.random.split(key, 3)
        bound = 1.0 / jnp.sqrt(jnp.float32(fan_in))
        params[f"w{i}"] = jax.random.uniform(
            kw, (fan_in, fan_out), jnp.float32, -bound, bound)
        params[f"b{i}"] = jax.random.uniform(
            kb, (1, fan_out), jnp.float32, -bound, bound)
    return params


def pack_critic_params(params, state_dim, action_dim, weight_dtype=jnp.bfloat16):
    """Host-side, one-time packing into 3 operands: two contiguous bf16 weight
    slabs and one f32 bias slab (zero padding is exact; see kernel comments)."""
    in_dim = state_dim + action_dim
    ra = max(in_dim, 8)

    # Fused layer-1/4 weights: cols [0:512) head 1 (real 0:400), [512:1024) head 2.
    w14 = jnp.zeros((ra, W14_COLS), jnp.float32)
    w14 = w14.at[:in_dim, 0:H1].set(params["w1"])
    w14 = w14.at[:in_dim, H1P:H1P + H1].set(params["w4"])

    # Transposed layer-3/6 weight rows; b3/b6 smuggled at lane H2P-1, which
    # multiplies the exact-1.0 activation lane created in b2/b5 below.
    wf = jnp.zeros((ra, H2P), jnp.float32)
    wf = wf.at[0, 0:H2].set(params["w3"][:, 0])
    wf = wf.at[1, 0:H2].set(params["w6"][:, 0])
    wf = wf.at[0, H2P - 1].set(params["b3"][0, 0])
    wf = wf.at[1, H2P - 1].set(params["b6"][0, 0])

    w_a = jnp.concatenate([w14, wf], axis=1).astype(weight_dtype)   # (ra, 1408)

    w2 = jnp.zeros((H1P, H2P), jnp.float32).at[0:H1, 0:H2].set(params["w2"])
    w5 = jnp.zeros((H1P, H2P), jnp.float32).at[0:H1, 0:H2].set(params["w5"])
    w_b = jnp.concatenate([w2, w5], axis=1).astype(weight_dtype)    # (512, 768)

    b14 = jnp.zeros((1, W14_COLS), jnp.float32)
    b14 = b14.at[0, 0:H1].set(params["b1"][0])
    b14 = b14.at[0, H1P:H1P + H1].set(params["b4"][0])
    # Lane H2P-1 of b2/b5 is 1.0; the matching weight column of w2/w5 is all
    # zeros, so g{1,2}[:, 383] == relu(1.0) == 1.0 exactly (carries b3/b6).
    b2 = (jnp.zeros((1, H2P), jnp.float32)
          .at[0, 0:H2].set(params["b2"][0]).at[0, H2P - 1].set(1.0))
    b5 = (jnp.zeros((1, H2P), jnp.float32)
          .at[0, 0:H2].set(params["b5"][0]).at[0, H2P - 1].set(1.0))
    b = jnp.concatenate([b14, b2, b5], axis=1)                      # (1, 1792)

    return dict(w_a=w_a, w_b=w_b, b=b)


def critic_forward_ref(x, u, params):
    """Plain-JAX reference mirroring the kernel numerics: bf16 weights and
    activations into the MXU layers (f32 accumulation), f32 multiply + lane
    reduce for the final projections, bf16-rounded b3/b6."""
    bf16, f32 = jnp.bfloat16, jnp.float32

    def lin(a, w, b):
        return jnp.dot(a.astype(bf16), w.astype(bf16),
                       preferred_element_type=f32) + b

    xu = jnp.concatenate([x, u], axis=1)
    g1 = jax.nn.relu(lin(jax.nn.relu(lin(xu, params["w1"], params["b1"])),
                         params["w2"], params["b2"]))
    g2 = jax.nn.relu(lin(jax.nn.relu(lin(xu, params["w4"], params["b4"])),
                         params["w5"], params["b5"]))
    w3 = params["w3"][:, 0].astype(bf16).astype(f32)
    w6 = params["w6"][:, 0].astype(bf16).astype(f32)
    b3 = params["b3"][0, 0].astype(bf16).astype(f32)
    b6 = params["b6"][0, 0].astype(bf16).astype(f32)
    q1 = jnp.sum(g1 * w3, axis=-1, keepdims=True) + b3
    q2 = jnp.sum(g2 * w6, axis=-1, keepdims=True) + b6
    return q1, q2


if __name__ == "__main__":
    state_dim, action_dim, batch = 12, 4, 8

    key = jax.random.PRNGKey(0)
    kp, kx, ku = jax.random.split(key, 3)
    params = init_critic_params(kp, state_dim, action_dim)
    kparams = pack_critic_params(params, state_dim, action_dim)

    x = jax.random.normal(kx, (batch, state_dim), jnp.float32)
    u = jax.random.normal(ku, (batch, action_dim), jnp.float32)

    q1, q2 = critic_forward(x, u, kparams)
    q1 = jax.block_until_ready(q1)
    q2 = jax.block_until_ready(q2)

    q1_ref, q2_ref = critic_forward_ref(x, u, params)
    assert q1.shape == (batch, 1) and q2.shape == (batch, 1)
    assert jnp.allclose(q1, q1_ref, atol=2e-3, rtol=2e-3)
    assert jnp.allclose(q2, q2_ref, atol=2e-3, rtol=2e-3)

    print("KERNEL_OK")
</pallas_src>

<mosaic_0001>
module attributes {stable_mosaic.version = 11 : i64} {
  func.func @_critic_kernel(%arg0: memref<8x12xf32, #tpu.memory_space<vmem>>, %arg1: memref<8x4xf32, #tpu.memory_space<vmem>>, %arg2: memref<16x1408xbf16, #tpu.memory_space<vmem>>, %arg3: memref<512x768xbf16, #tpu.memory_space<vmem>>, %arg4: memref<1x1792xf32, #tpu.memory_space<vmem>>, %arg5: memref<8x1xf32, #tpu.memory_space<vmem>>, %arg6: memref<8x1xf32, #tpu.memory_space<vmem>>) attributes {dimension_semantics = [], scalar_prefetch = 0 : i64, scratch_operands = 0 : i64, tpu.core_type = #tpu.core_type<tc>} {
    %c0 = arith.constant 0 : index
    %c0_0 = arith.constant 0 : index
    %0 = vector.load %arg0[%c0, %c0_0] : memref<8x12xf32, #tpu.memory_space<vmem>>, vector<8x12xf32>
    %c0_1 = arith.constant 0 : index
    %c0_2 = arith.constant 0 : index
    %1 = vector.load %arg1[%c0_1, %c0_2] : memref<8x4xf32, #tpu.memory_space<vmem>>, vector<8x4xf32>
    %2 = tpu.concatenate %0, %1 in 1 : vector<8x12xf32>, vector<8x4xf32> -> vector<8x16xf32>
    %3 = arith.truncf %2 : vector<8x16xf32> to vector<8x16xbf16>
    %c0_3 = arith.constant 0 : index
    %c0_4 = arith.constant 0 : index
    %4 = vector.load %arg2[%c0_3, %c0_4] : memref<16x1408xbf16, #tpu.memory_space<vmem>>, vector<16x1024xbf16>
    %c0_5 = arith.constant 0 : index
    %c1024 = arith.constant 1024 : index
    %5 = vector.load %arg2[%c0_5, %c1024] : memref<16x1408xbf16, #tpu.memory_space<vmem>>, vector<16x384xbf16>
    %6 = arith.extf %5 : vector<16x384xbf16> to vector<16x384xf32>
    %c0_6 = arith.constant 0 : index
    %c0_7 = arith.constant 0 : index
    %7 = vector.load %arg3[%c0_6, %c0_7] : memref<512x768xbf16, #tpu.memory_space<vmem>>, vector<512x384xbf16>
    %c0_8 = arith.constant 0 : index
    %c384 = arith.constant 384 : index
    %8 = vector.load %arg3[%c0_8, %c384] : memref<512x768xbf16, #tpu.memory_space<vmem>>, vector<512x384xbf16>
    %c0_9 = arith.constant 0 : index
    %c0_10 = arith.constant 0 : index
    %9 = vector.load %arg4[%c0_9, %c0_10] : memref<1x1792xf32, #tpu.memory_space<vmem>>, vector<1x1024xf32>
    %c0_11 = arith.constant 0 : index
    %c1024_12 = arith.constant 1024 : index
    %10 = vector.load %arg4[%c0_11, %c1024_12] : memref<1x1792xf32, #tpu.memory_space<vmem>>, vector<1x384xf32>
    %c0_13 = arith.constant 0 : index
    %c1408 = arith.constant 1408 : index
    %11 = vector.load %arg4[%c0_13, %c1408] : memref<1x1792xf32, #tpu.memory_space<vmem>>, vector<1x384xf32>
    %cst = arith.constant dense<0.000000e+00> : vector<8x1024xf32>
    %12 = tpu.matmul %3, %4, %cst {dimension_numbers = #tpu.dot_dimension_numbers<[1], [0], [0], [1], [0, 0, 1, 1], [], []>} : vector<8x16xbf16>, vector<16x1024xbf16>, vector<8x1024xf32> -> vector<8x1024xf32>
    %13 = vector.broadcast %9 : vector<1x1024xf32> to vector<8x1024xf32>
    %14 = arith.addf %12, %13 : vector<8x1024xf32>
    %cst_14 = arith.constant 0.000000e+00 : f32
    %15 = vector.broadcast %cst_14 : f32 to vector<8x1024xf32>
    %16 = arith.maximumf %14, %15 : vector<8x1024xf32>
    %17 = vector.extract_strided_slice %16 {offsets = [0, 0], sizes = [8, 512], strides = [1, 1]} : vector<8x1024xf32> to vector<8x512xf32>
    %18 = arith.truncf %17 : vector<8x512xf32> to vector<8x512xbf16>
    %19 = vector.extract_strided_slice %16 {offsets = [0, 512], sizes = [8, 512], strides = [1, 1]} : vector<8x1024xf32> to vector<8x512xf32>
    %20 = arith.truncf %19 : vector<8x512xf32> to vector<8x512xbf16>
    %cst_15 = arith.constant dense<0.000000e+00> : vector<8x384xf32>
    %21 = tpu.matmul %18, %7, %cst_15 {dimension_numbers = #tpu.dot_dimension_numbers<[1], [0], [0], [1], [0, 0, 1, 1], [], []>} : vector<8x512xbf16>, vector<512x384xbf16>, vector<8x384xf32> -> vector<8x384xf32>
    %22 = vector.broadcast %10 : vector<1x384xf32> to vector<8x384xf32>
    %23 = arith.addf %21, %22 : vector<8x384xf32>
    %cst_16 = arith.constant 0.000000e+00 : f32
    %24 = vector.broadcast %cst_16 : f32 to vector<8x384xf32>
    %25 = arith.maximumf %23, %24 : vector<8x384xf32>
    %cst_17 = arith.constant dense<0.000000e+00> : vector<8x384xf32>
    %26 = tpu.matmul %20, %8, %cst_17 {dimension_numbers = #tpu.dot_dimension_numbers<[1], [0], [0], [1], [0, 0, 1, 1], [], []>} : vector<8x512xbf16>, vector<512x384xbf16>, vector<8x384xf32> -> vector<8x384xf32>
    %27 = vector.broadcast %11 : vector<1x384xf32> to vector<8x384xf32>
    %28 = arith.addf %26, %27 : vector<8x384xf32>
    %cst_18 = arith.constant 0.000000e+00 : f32
    %29 = vector.broadcast %cst_18 : f32 to vector<8x384xf32>
    %30 = arith.maximumf %28, %29 : vector<8x384xf32>
    %31 = vector.extract_strided_slice %6 {offsets = [0, 0], sizes = [1, 384], strides = [1, 1]} : vector<16x384xf32> to vector<1x384xf32>
    %32 = vector.broadcast %31 : vector<1x384xf32> to vector<8x384xf32>
    %33 = arith.mulf %25, %32 : vector<8x384xf32>
    %cst_19 = arith.constant dense<0.000000e+00> : vector<8xf32>
    %34 = vector.multi_reduction <add>, %33, %cst_19 [1] : vector<8x384xf32> to vector<8xf32>
    %35 = vector.shape_cast %34 : vector<8xf32> to vector<8x1xf32>
    %c0_20 = arith.constant 0 : index
    %c0_21 = arith.constant 0 : index
    %36 = vector.load %arg5[%c0_20, %c0_21] : memref<8x1xf32, #tpu.memory_space<vmem>>, vector<8x1xf32>
    tpu.vector_store %arg5[%c0_20, %c0_21], %35 {strides = array<i32>} : memref<8x1xf32, #tpu.memory_space<vmem>>, vector<8x1xf32>,
    %37 = vector.extract_strided_slice %6 {offsets = [1, 0], sizes = [1, 384], strides = [1, 1]} : vector<16x384xf32> to vector<1x384xf32>
    %38 = vector.broadcast %37 : vector<1x384xf32> to vector<8x384xf32>
    %39 = arith.mulf %30, %38 : vector<8x384xf32>
    %cst_22 = arith.constant dense<0.000000e+00> : vector<8xf32>
    %40 = vector.multi_reduction <add>, %39, %cst_22 [1] : vector<8x384xf32> to vector<8xf32>
    %41 = vector.shape_cast %40 : vector<8xf32> to vector<8x1xf32>
    %c0_23 = arith.constant 0 : index
    %c0_24 = arith.constant 0 : index
    %42 = vector.load %arg6[%c0_23, %c0_24] : memref<8x1xf32, #tpu.memory_space<vmem>>, vector<8x1xf32>
    tpu.vector_store %arg6[%c0_23, %c0_24], %41 {strides = array<i32>} : memref<8x1xf32, #tpu.memory_space<vmem>>, vector<8x1xf32>,
    return
  }
}

</mosaic_0001>

<bundles_post_ra>
// kernel: tpu_custom_call.1
= control target key start
LH: loop header
LB: loop body
LE: loop exit
PB: predicated region body
PF: predicated region fallthrough
CT: control target
= control target key end

     0   :  { %12 = vsyncpa [#allocation3], 0  ;;  %s2818_s0 = inlined_call_operand.vmem [shape: f32[8,12], index: 0, kind: input, shape index: {}]   ;;  %s2819_s1 = inlined_call_operand.vmem [shape: f32[8,4], index: 1, kind: input, shape index: {}]   ;;  %s2820_s2 = inlined_call_operand.hbm [shape: bf16[16,1408], index: 2, kind: input, shape index: {}]   ;;  %s2821_s3 = inlined_call_operand.hbm [shape: bf16[512,768], index: 3, kind: input, shape index: {}]   ;;  %s2822_s4 = inlined_call_operand.vmem [shape: f32[1,1792], index: 4, kind: input, shape index: {}]   ;;  %s2823_s5 = inlined_call_operand.vmem [shape: f32[8,1], index: 5, kind: output, shape index: {0}]   ;;  %s2824_s6 = inlined_call_operand.vmem [shape: f32[8,1], index: 6, kind: output, shape index: {1}]  }
   0x1   :  { %13 = vsyncpa [#allocation5], 0  ;;  %s2662_s21 = smov [#allocation2]   ;;  %s2614_s25 = scalar_lea.hbm %s2820_s2, 1408 }
   0x2   :  { %s23_s22 = sshll.u32 %s2662_s21, 4  ;;  %p2615_p0 = scmp.ne.s32.totalorder %s2820_s2, %s2614_s25  ;;  %s24_s22 = int_to_ptr.vmem [resolvable:$true] %s23_s22 }
   0x3   :  { %p2618_p1 = scmp.lt.u32.totalorder %s2614_s25, %s2820_s2 }
   0x5   :  { %p2620_p2 = pnand %p2618_p1, %p2615_p0 }
   0x7   :  { %2623 = shalt.err (!%p2620_p2)
}
   0x8   :  { %s2624_s30 = scalar_lea.vmem %s24_s22, 1408  ;;  %p2629_p4 = scmp.lt.s32.totalorder %s24_s22, %s24_s22 }
   0x9   :  { %p2625_p3 = scmp.ne.s32.totalorder %s24_s22, %s2624_s30  ;;  %p2630_p5 = scmp.lt.s32.totalorder %s2624_s30, %s2624_s30 }
   0xb   :  { %p2631_p6 = por %p2630_p5, %p2629_p4 }
   0xd   :  { %p2632_p7 = pnand %p2631_p6, %p2625_p3 }
   0xf   :  { %2635 = shalt.err (!%p2632_p7)
}
  0x10   :  { %s2663_s7 = smov 704   ;;  %s2664_s8 = smov 44  }
  0x11   :  { %29 = dma.hbm_to_vmem [thread:$0]  %s2820_s2, 1408, %s24_s22, [#allocation3], %s2663_s7, %s2663_s7, %s2664_s8  }
  0x12   :  { %s2665_s11 = smov [#allocation4]   ;;  %s2636_s15 = scalar_lea.hbm %s2821_s3, 24576 }
  0x13   :  { %s35_s12 = sshll.u32 %s2665_s11, 4  ;;  %p2637_p8 = scmp.ne.s32.totalorder %s2821_s3, %s2636_s15  ;;  %s36_s12 = int_to_ptr.vmem [resolvable:$true] %s35_s12 }
  0x14   :  { %p2640_p9 = scmp.lt.u32.totalorder %s2636_s15, %s2821_s3 }
  0x16   :  { %p2642_p10 = pnand %p2640_p9, %p2637_p8 }
  0x18   :  { %2645 = shalt.err (!%p2642_p10)
}
  0x19   :  { %s2646_s20 = scalar_lea.vmem %s36_s12, 24576  ;;  %p2651_p12 = scmp.lt.s32.totalorder %s36_s12, %s36_s12 }
  0x1a   :  { %p2647_p11 = scmp.ne.s32.totalorder %s36_s12, %s2646_s20  ;;  %p2652_p13 = scmp.lt.s32.totalorder %s2646_s20, %s2646_s20 }
  0x1c   :  { %p2653_p0 = por %p2652_p13, %p2651_p12 }
  0x1e   :  { %p2654_p1 = pnand %p2653_p0, %p2647_p11 }
  0x20   :  { %2657 = shalt.err (!%p2654_p1)
}
  0x21   :  { %s2666_s2 = smov 384   ;;  %s2667_s21 = smov 24  }
  0x22   :  { %41 = dma.hbm_to_vmem [thread:$0]  %s2821_s3, 24576, %s36_s12, [#allocation5], %s2666_s2, %s2666_s2, %s2667_s21  }
  0x23   :  { %2658 = dma.done.wait [#allocation3], 1408  }
  0x24   :  { %2659 = vsyncadd [#allocation3], 4294965888 }
  0x25   :  { %2660 = dma.done.wait [#allocation5], 24576  }
  0x26   :  { %2661 = vsyncadd [#allocation5], 4294942720  ;;  %v2668_v0 = vmov 0   ;;  %v52_v1 = vld [vmem:[%s2819_s1] sm:$0xff]  ;;  %s2669_s26 = smov 12   ;;  %vm57_vm0 = vcmask 97280  }
  0x27   :  { %449 = vmatprep.mubr.bf16.mxu0 %v2668_v0  ;;  %490 = vmatprep.mubr.bf16.mxu1 %v2668_v0  ;;  %v2346_v2 = vld [vmem:[#allocation2 + $0x4] ss:$44 sps:$4 sm:$0xff]   ;;  %v2348_v3 = vld [vmem:[#allocation2 + $0xc] ss:$44 sps:$4 sm:$0xff]   ;;  %v2351_v5 = vld [vmem:[#allocation2 + $0x8] ss:$44 sps:$4 sm:$0xff]  }
  0x28   :  { %54 = vrot.lane.b32.xlu0 %v52_v1, %s2669_s26  ;;  %v2350_v4 = vld [vmem:[#allocation2] ss:$44 sps:$4 sm:$0xff]   ;;  %417 = vmatprep.subr.bf16.mxu0 %v2346_v2  ;;  %v2357_v7 = vld [vmem:[#allocation2 + $0x1c] ss:$44 sps:$4 sm:$0xff]   ;;  %vm413_vm1 = vcmask 130048   ;;  %vm2002_vm2 = vcmask 7168  }
  0x29   :  { %458 = vmatprep.subr.bf16.mxu1 %v2348_v3  ;;  %418 = vmatpush1.bf16.msra.mxu0 %v2350_v4  ;;  %v2354_v6 = vld [vmem:[#allocation2 + $0x14] ss:$44 sps:$4 sm:$0xff]   ;;  %v2352_v11 = vld [vmem:[#allocation2 + $0x10] ss:$44 sps:$4 sm:$0xff]   ;;  %v2355_v12 = vld [vmem:[#allocation2 + $0x18] ss:$44 sps:$4 sm:$0xff]  }
  0x2a   :  { %459 = vmatpush1.bf16.msra.mxu1 %v2351_v5  ;;  %499 = vmatprep.subr.bf16.mxu0 %v2354_v6  ;;  %v51_v8 = vld [vmem:[%s2818_s0] sm:$0xff]  ;;  %v2360_v14 = vld [vmem:[#allocation4 + $0x4] ss:$24 sps:$4 sm:$0xff]   ;;  %v2358_v16 = vld [vmem:[#allocation4] ss:$24 sps:$4 sm:$0xff]  }
  0x2b   :  { %540 = vmatprep.subr.bf16.mxu1 %v2357_v7  ;;  %v2385_v15 = vld [vmem:[#allocation4 + $0x188] ss:$24 sps:$4 sm:$0xff]   ;;  %v2363_v18 = vld [vmem:[#allocation4 + $0x34] ss:$24 sps:$4 sm:$0xff]   ;;  %v2390_v19 = vld [vmem:[#allocation4 + $0x1b8] ss:$24 sps:$4 sm:$0xff]  }
  0x2c   :  { %v2386_v17 = vld [vmem:[#allocation4 + $0x8] ss:$24 sps:$4 sm:$0xff]   ;;  %v2391_v21 = vld [vmem:[#allocation4 + $0x38] ss:$24 sps:$4 sm:$0xff]   ;;  %v2366_v22 = vld [vmem:[#allocation4 + $0x64] ss:$24 sps:$4 sm:$0xff]  }
  0x2d   :  { %v2361_v20 = vld [vmem:[#allocation4 + $0x30] ss:$24 sps:$4 sm:$0xff]   ;;  %v2364_v24 = vld [vmem:[#allocation4 + $0x60] ss:$24 sps:$4 sm:$0xff]   ;;  %v2369_v26 = vld [vmem:[#allocation4 + $0x94] ss:$24 sps:$4 sm:$0xff]  }
  0x2e   :  { %v2395_v23 = vld [vmem:[#allocation4 + $0x1e8] ss:$24 sps:$4 sm:$0xff]   ;;  %v2400_v27 = vld [vmem:[#allocation4 + $0x218] ss:$24 sps:$4 sm:$0xff]   ;;  %v2372_v30 = vld [vmem:[#allocation4 + $0xc4] ss:$24 sps:$4 sm:$0xff]  }
  0x2f   :  { %v2396_v25 = vld [vmem:[#allocation4 + $0x68] ss:$24 sps:$4 sm:$0xff]   ;;  %v2401_v29 = vld [vmem:[#allocation4 + $0x98] ss:$24 sps:$4 sm:$0xff]   ;;  %v2375_v34 = vld [vmem:[#allocation4 + $0xf4] ss:$24 sps:$4 sm:$0xff]  }
  0x30   :  { %v2367_v28 = vld [vmem:[#allocation4 + $0x90] ss:$24 sps:$4 sm:$0xff]   ;;  %v2370_v32 = vld [vmem:[#allocation4 + $0xc0] ss:$24 sps:$4 sm:$0xff]   ;;  %v2378_v38 = vld [vmem:[#allocation4 + $0x124] ss:$24 sps:$4 sm:$0xff]  }
  0x31   :  { %v2405_v31 = vld [vmem:[#allocation4 + $0x248] ss:$24 sps:$4 sm:$0xff]   ;;  %v2410_v35 = vld [vmem:[#allocation4 + $0x278] ss:$24 sps:$4 sm:$0xff]   ;;  %v2381_v40 = vld [vmem:[#allocation4 + $0x154] ss:$24 sps:$4 sm:$0xff]  }
  0x32   :  { %v2406_v33 = vld [vmem:[#allocation4 + $0xc8] ss:$24 sps:$4 sm:$0xff]   ;;  %v2411_v37 = vld [vmem:[#allocation4 + $0xf8] ss:$24 sps:$4 sm:$0xff]   ;;  %v2384_v42 = vld [vmem:[#allocation4 + $0x184] ss:$24 sps:$4 sm:$0xff]  }
  0x33   :  { %v2373_v36 = vld [vmem:[#allocation4 + $0xf0] ss:$24 sps:$4 sm:$0xff]   ;;  %v2376_v39 = vld [vmem:[#allocation4 + $0x120] ss:$24 sps:$4 sm:$0xff]   ;;  %v2389_v44 = vld [vmem:[#allocation4 + $0x1b4] ss:$24 sps:$4 sm:$0xff]  }
  0x34   :  { %v2379_v41 = vld [vmem:[#allocation4 + $0x150] ss:$24 sps:$4 sm:$0xff]   ;;  %v2382_v43 = vld [vmem:[#allocation4 + $0x180] ss:$24 sps:$4 sm:$0xff]   ;;  %v2394_v46 = vld [vmem:[#allocation4 + $0x1e4] ss:$24 sps:$4 sm:$0xff]  }
  0x35   :  { %v2387_v45 = vld [vmem:[#allocation4 + $0x1b0] ss:$24 sps:$4 sm:$0xff]   ;;  %v2392_v47 = vld [vmem:[#allocation4 + $0x1e0] ss:$24 sps:$4 sm:$0xff]   ;;  %v2399_v48 = vld [vmem:[#allocation4 + $0x214] ss:$24 sps:$4 sm:$0xff]  }
  0x36   :  { %v2397_v49 = vld [vmem:[#allocation4 + $0x210] ss:$24 sps:$4 sm:$0xff]   ;;  %v2404_v50 = vld [vmem:[#allocation4 + $0x244] ss:$24 sps:$4 sm:$0xff]   ;;  %v2402_v51 = vld [vmem:[#allocation4 + $0x240] ss:$24 sps:$4 sm:$0xff]  }
  0x37   :  { %v2409_v52 = vld [vmem:[#allocation4 + $0x274] ss:$24 sps:$4 sm:$0xff]   ;;  %v2407_v53 = vld [vmem:[#allocation4 + $0x270] ss:$24 sps:$4 sm:$0xff]   ;;  %v2414_v54 = vld [vmem:[#allocation4 + $0x2a4] ss:$24 sps:$4 sm:$0xff]  }
  0x38   :  { %v2415_v55 = vld [vmem:[#allocation4 + $0x2a8] ss:$24 sps:$4 sm:$0xff]   ;;  %v2419_v58 = vld [vmem:[#allocation4 + $0x2d4] ss:$24 sps:$4 sm:$0xff]   ;;  %v2420_v59 = vld [vmem:[#allocation4 + $0x2d8] ss:$24 sps:$4 sm:$0xff]  }
  0x39   :  { %v2412_v56 = vld [vmem:[#allocation4 + $0x2a0] ss:$24 sps:$4 sm:$0xff]   ;;  %v2417_v60 = vld [vmem:[#allocation4 + $0x2d0] ss:$24 sps:$4 sm:$0xff]   ;;  %v2424_v62 = vld [vmem:[#allocation4 + $0x304] ss:$24 sps:$4 sm:$0xff]  }
  0x3a   :  { %v2416_v57 = vld [vmem:[#allocation4 + $0x128] ss:$24 sps:$4 sm:$0xff]   ;;  %v2421_v61 = vld [vmem:[#allocation4 + $0x158] ss:$24 sps:$4 sm:$0xff]  }
  0x3b   :  { %v2425_v63 = vld [vmem:[#allocation4 + $0x488] ss:$24 sps:$4 sm:$0xff]  }
  0x3c   :  { %v2747_v3 = vld [vmem:[%s2822_s4] sm:$0xff] }
  0x9a   :  { %v55_v9 = vpop.permute.xlu0 %54 }
  0x9b   :  { %v58_v10 = vsel %vm57_vm0, %v51_v8, %v55_v9 }
  0x9c   :  { %v59_v13 = vpack.c.bf16 %v58_v10, %v58_v10 }
  0x9e   :  { %2042 = vmatmul.mubr.msk.bf16.vlgmr.msra.gmra.mrb[0].mxu0 %vm413_vm1, %v59_v13  ;;  %2043 = vmatmul.mubr.msk.bf16.vlgmr.msra.gmra.mrb[0].mxu1 %vm413_vm1, %v59_v13 }
  0x9f   :  { %500 = vmatpush1.bf16.msra.mxu0 %v2352_v11  ;;  %541 = vmatpush1.bf16.msra.mxu1 %v2355_v12 }
  0xa0   :  { %531 = vmatprep.mubr.bf16.mxu0 %v2668_v0  ;;  %572 = vmatprep.mubr.bf16.mxu1 %v2668_v0  ;;  %v333_v0 = vlaneseq }
  0xa1   :  { %1125 = vmatprep.subr.bf16.mxu0 %v2360_v14  ;;  %2238 = vmatprep.subr.bf16.mxu1 %v2385_v15 }
  0xa2   :  { %v2739_v1 = vshrl.u32 %v333_v0, 7 }
  0xa4   :  { %v2742_v2 = vsub.s32 0, %v2739_v1  ;;  %v2750_v4 = vsub.s32 1, %v2739_v1  ;;  %v347_v5 = vsub.s32 3, %v2739_v1 }
  0xa6   :  { %2044 = vmatmul.mubr.msk.bf16.vlgmr.msra.gmra.mrb[4].mxu0 %vm413_vm1, %v59_v13  ;;  %2045 = vmatmul.mubr.msk.bf16.vlgmr.msra.gmra.mrb[4].mxu1 %vm413_vm1, %v59_v13  ;;  %v336_v6 = vrot.slane %v2747_v3, %v2742_v2  ;;  %v340_v7 = vrot.slane %v2747_v3, %v2750_v4  ;;  %v348_v8 = vrot.slane %v2747_v3, %v347_v5  ;;  %v2459_v5 = vld [vmem:[#allocation4 + $0x454] ss:$24 sps:$4 sm:$0xff]  }
  0xa7   :  { %1126 = vmatpush1.bf16.msra.mxu0 %v2358_v16  ;;  %2239 = vmatpush3.bf16.msra.mxu1 %v2386_v17 }
  0xa8   :  { %1127 = vmatprep.subr.bf16.mxu0 %v2363_v18  ;;  %2240 = vmatprep.subr.bf16.mxu1 %v2390_v19 }
  0xab   :  { %1128 = vmatpush1.bf16.msra.mxu0 %v2361_v20  ;;  %2241 = vmatpush3.bf16.msra.mxu1 %v2391_v21 }
  0xac   :  { %1129 = vmatprep.subr.bf16.mxu0 %v2366_v22  ;;  %2242 = vmatprep.subr.bf16.mxu1 %v2395_v23 }
  0xaf   :  { %1130 = vmatpush1.bf16.msra.mxu0 %v2364_v24  ;;  %2243 = vmatpush3.bf16.msra.mxu1 %v2396_v25  ;;  %v2422_v24 = vld [vmem:[#allocation4 + $0x300] ss:$24 sps:$4 sm:$0xff]  }
  0xb0   :  { %1131 = vmatprep.subr.bf16.mxu0 %v2369_v26  ;;  %2244 = vmatprep.subr.bf16.mxu1 %v2400_v27  ;;  %v2426_v25 = vld [vmem:[#allocation4 + $0x308] ss:$24 sps:$4 sm:$0xff]  }
  0xb3   :  { %1132 = vmatpush1.bf16.msra.mxu0 %v2367_v28  ;;  %2245 = vmatpush3.bf16.msra.mxu1 %v2401_v29  ;;  %v2429_v29 = vld [vmem:[#allocation4 + $0x334] ss:$24 sps:$4 sm:$0xff]  }
  0xb4   :  { %1133 = vmatprep.subr.bf16.mxu0 %v2372_v30  ;;  %2246 = vmatprep.subr.bf16.mxu1 %v2405_v31  ;;  %v2430_v30 = vld [vmem:[#allocation4 + $0x4b8] ss:$24 sps:$4 sm:$0xff]  }
  0xb7   :  { %1134 = vmatpush1.bf16.msra.mxu0 %v2370_v32  ;;  %2247 = vmatpush3.bf16.msra.mxu1 %v2406_v33 }
  0xb8   :  { %1135 = vmatprep.subr.bf16.mxu0 %v2375_v34  ;;  %2248 = vmatprep.subr.bf16.mxu1 %v2410_v35 }
  0xbb   :  { %1136 = vmatpush1.bf16.msra.mxu0 %v2373_v36  ;;  %2249 = vmatpush3.bf16.msra.mxu1 %v2411_v37  ;;  %v2427_v36 = vld [vmem:[#allocation4 + $0x330] ss:$24 sps:$4 sm:$0xff]  }
  0xbc   :  { %1137 = vmatprep.subr.bf16.mxu0 %v2378_v38  ;;  %2250 = vmatprep.subr.bf16.mxu1 %v2415_v55  ;;  %v2431_v37 = vld [vmem:[#allocation4 + $0x338] ss:$24 sps:$4 sm:$0xff]   ;;  %v355_v55 = vsub.s32 5, %v2739_v1 }
  0xbf   :  { %1138 = vmatpush1.bf16.msra.mxu0 %v2376_v39  ;;  %2251 = vmatpush3.bf16.msra.mxu1 %v2416_v57  ;;  %v2451_v57 = vld [vmem:[#allocation4 + $0x3f8] ss:$24 sps:$4 sm:$0xff]  }
  0xc0   :  { %1139 = vmatprep.subr.bf16.mxu0 %v2381_v40  ;;  %2252 = vmatprep.subr.bf16.mxu1 %v2420_v59  ;;  %v2434_v40 = vld [vmem:[#allocation4 + $0x364] ss:$24 sps:$4 sm:$0xff]  }
  0xc1   :  { %v2454_v59 = vld [vmem:[#allocation4 + $0x424] ss:$24 sps:$4 sm:$0xff]  }
  0xc3   :  { %1140 = vmatpush1.bf16.msra.mxu0 %v2379_v41  ;;  %2253 = vmatpush3.bf16.msra.mxu1 %v2421_v61  ;;  %v2435_v41 = vld [vmem:[#allocation4 + $0x4e8] ss:$24 sps:$4 sm:$0xff]   ;;  %v356_v61 = vrot.slane %v2747_v3, %v355_v55  ;;  %v2518_v55 = vld [vmem:[#allocation4 + $0x1c4] ss:$24 sps:$4 sm:$0xff]  }
  0xc4   :  { %1141 = vmatprep.subr.bf16.mxu0 %v2384_v42  ;;  %2260 = vmatprep.subr.bf16.mxu1 %v2425_v63  ;;  %v2432_v42 = vld [vmem:[#allocation4 + $0x360] ss:$24 sps:$4 sm:$0xff]  }
  0xc5   :  { %v2456_v63 = vld [vmem:[#allocation4 + $0x428] ss:$24 sps:$4 sm:$0xff]  }
  0xc7   :  { %1142 = vmatpush1.bf16.msra.mxu0 %v2382_v43  ;;  %v2436_v43 = vld [vmem:[#allocation4 + $0x368] ss:$24 sps:$4 sm:$0xff]  }
  0xc8   :  { %1143 = vmatprep.subr.bf16.mxu0 %v2389_v44  ;;  %v2439_v44 = vld [vmem:[#allocation4 + $0x394] ss:$24 sps:$4 sm:$0xff]  }
  0xcb   :  { %1144 = vmatpush1.bf16.msra.mxu0 %v2387_v45  ;;  %v2440_v45 = vld [vmem:[#allocation4 + $0x518] ss:$24 sps:$4 sm:$0xff]  }
  0xcc   :  { %1145 = vmatprep.subr.bf16.mxu0 %v2394_v46  ;;  %v2437_v46 = vld [vmem:[#allocation4 + $0x390] ss:$24 sps:$4 sm:$0xff]  }
  0xcf   :  { %1146 = vmatpush1.bf16.msra.mxu0 %v2392_v47  ;;  %v2441_v47 = vld [vmem:[#allocation4 + $0x398] ss:$24 sps:$4 sm:$0xff]  }
  0xd0   :  { %1147 = vmatprep.subr.bf16.mxu0 %v2399_v48  ;;  %v2444_v48 = vld [vmem:[#allocation4 + $0x3c4] ss:$24 sps:$4 sm:$0xff]  }
  0xd3   :  { %1148 = vmatpush1.bf16.msra.mxu0 %v2397_v49  ;;  %v2445_v49 = vld [vmem:[#allocation4 + $0x548] ss:$24 sps:$4 sm:$0xff]  }
  0xd4   :  { %1149 = vmatprep.subr.bf16.mxu0 %v2404_v50  ;;  %v2442_v50 = vld [vmem:[#allocation4 + $0x3c0] ss:$24 sps:$4 sm:$0xff]  }
  0xd7   :  { %1150 = vmatpush1.bf16.msra.mxu0 %v2402_v51  ;;  %v2446_v51 = vld [vmem:[#allocation4 + $0x3c8] ss:$24 sps:$4 sm:$0xff]  }
  0xd8   :  { %1151 = vmatprep.subr.bf16.mxu0 %v2409_v52  ;;  %v2769_v52 = vsub.s32 2, %v2739_v1 }
  0xdb   :  { %1152 = vmatpush1.bf16.msra.mxu0 %v2407_v53  ;;  %v2449_v53 = vld [vmem:[#allocation4 + $0x3f4] ss:$24 sps:$4 sm:$0xff]  }
  0xdc   :  { %1153 = vmatprep.subr.bf16.mxu0 %v2414_v54  ;;  %v2450_v54 = vld [vmem:[#allocation4 + $0x578] ss:$24 sps:$4 sm:$0xff]  }
  0xdf   :  { %1154 = vmatpush1.bf16.msra.mxu0 %v2412_v56  ;;  %v2447_v56 = vld [vmem:[#allocation4 + $0x3f0] ss:$24 sps:$4 sm:$0xff]  }
  0xe0   :  { %1155 = vmatprep.subr.bf16.mxu0 %v2419_v58  ;;  %v344_v58 = vrot.slane %v2747_v3, %v2769_v52 }
  0xe3   :  { %1156 = vmatpush1.bf16.msra.mxu0 %v2417_v60  ;;  %v2455_v60 = vld [vmem:[#allocation4 + $0x5a8] ss:$24 sps:$4 sm:$0xff]  }
  0xe4   :  { %1166 = vmatprep.subr.bf16.mxu0 %v2424_v62  ;;  %v2452_v62 = vld [vmem:[#allocation4 + $0x420] ss:$24 sps:$4 sm:$0xff]  }
 0x171   :  { %v451_v9 = vpop.f32.mrb[0].mxu0  ;;  %v2758_v10 = vpop.f32.mrb[0].mxu1 }
 0x172   :  { %v452_v11 = vadd.f32 %v451_v9, %v336_v6  ;;  %v453_v12 = vpop.f32.mrb[1].mxu0  ;;  %v494_v13 = vpop.f32.mrb[1].mxu1  ;;  %v493_v0 = vadd.f32 %v2758_v10, %v344_v58  ;;  %v2460_v6 = vld [vmem:[#allocation4 + $0x5d8] ss:$24 sps:$4 sm:$0xff]   ;;  %v2465_v10 = vld [vmem:[#allocation4 + $0xc] ss:$24 sps:$4 sm:$0xff]  }
 0x173   :  { %v454_v14 = vadd.f32 %v453_v12, %v340_v7  ;;  %v495_v15 = vadd.f32 %v494_v13, %v348_v8  ;;  %v455_v16 = vpop.f32.mrb[2].mxu0  ;;  %v496_v17 = vpop.f32.mrb[2].mxu1  ;;  %v2457_v8 = vld [vmem:[#allocation4 + $0x450] ss:$24 sps:$4 sm:$0xff]   ;;  %v2464_v12 = vld [vmem:[#allocation4 + $0x484] ss:$24 sps:$4 sm:$0xff]  }
 0x174   :  { %v581_v18 = vmax.f32 %v452_v11, 0.0  ;;  %v456_v19 = vpop.f32.mrb[3].mxu0  ;;  %v497_v20 = vpop.f32.mrb[3].mxu1  ;;  %v2461_v9 = vld [vmem:[#allocation4 + $0x458] ss:$24 sps:$4 sm:$0xff]   ;;  %v583_v11 = vmax.f32 %v493_v0, 0.0 }
 0x175   :  { %v582_v21 = vmax.f32 %v454_v14, 0.0  ;;  %v584_v22 = vmax.f32 %v495_v15, 0.0  ;;  %v2467_v13 = vld [vmem:[#allocation4 + $0x10] ss:$24 sps:$4 sm:$0xff]   ;;  %v2462_v15 = vld [vmem:[#allocation4 + $0x480] ss:$24 sps:$4 sm:$0xff]  }
 0x176   :  { %v589_v26 = vpack.c.bf16 %v581_v18, %v581_v18  ;;  %v2777_v16 = vpack.c.bf16 %v583_v11, %v583_v11  ;;  %v2470_v17 = vld [vmem:[#allocation4 + $0x4b4] ss:$24 sps:$4 sm:$0xff]   ;;  %v2473_v18 = vld [vmem:[#allocation4 + $0x40] ss:$24 sps:$4 sm:$0xff]   ;;  %v2468_v20 = vld [vmem:[#allocation4 + $0x4b0] ss:$24 sps:$4 sm:$0xff]  }
 0x177   :  { %v590_v23 = vpack.c.bf16 %v582_v21, %v582_v21  ;;  %v592_v31 = vpack.c.bf16 %v584_v22, %v584_v22  ;;  %v2471_v21 = vld [vmem:[#allocation4 + $0x3c] ss:$24 sps:$4 sm:$0xff]   ;;  %v2522_v58 = vld [vmem:[#allocation4 + $0x1f0] ss:$24 sps:$4 sm:$0xff]   ;;  %v351_v11 = vsub.s32 4, %v2739_v1 }
 0x178   :  { %v2476_v22 = vld [vmem:[#allocation4 + $0x4e4] ss:$24 sps:$4 sm:$0xff]  }
 0x179   :  { %v2760_v27 = vpop.f32.mrb[4].mxu0  ;;  %v2762_v28 = vpop.f32.mrb[4].mxu1  ;;  %1157 = vmatprep.mubr.bf16.mxu0 %v590_v23  ;;  %1239 = vmatprep.mubr.bf16.mxu1 %v590_v23  ;;  %v2479_v23 = vld [vmem:[#allocation4 + $0x70] ss:$24 sps:$4 sm:$0xff]   ;;  %v2525_v0 = vld [vmem:[#allocation4 + $0x21c] ss:$24 sps:$4 sm:$0xff]  }
 0x17a   :  { %v2764_v32 = vpop.f32.mrb[5].mxu0  ;;  %v2766_v33 = vpop.f32.mrb[5].mxu1  ;;  %1158 = vmatmul.mubr.bf16.vlgmr.msra.gmra.mrb[8].mxu0 %v589_v26  ;;  %1240 = vmatmul.mubr.bf16.vlgmr.msra.gmra.mrb[8].mxu1 %v589_v26  ;;  %v2482_v26 = vld [vmem:[#allocation4 + $0x514] ss:$24 sps:$4 sm:$0xff]  }
 0x17b   :  { %1167 = vmatpush1.bf16.msra.mxu0 %v2422_v24  ;;  %2261 = vmatpush3.bf16.msra.mxu1 %v2426_v25  ;;  %v537_v34 = vpop.f32.mrb[6].mxu0  ;;  %v578_v35 = vpop.f32.mrb[6].mxu1  ;;  %v536_v7 = vadd.f32 %v2764_v32, %v356_v61  ;;  %v2474_v24 = vld [vmem:[#allocation4 + $0x4e0] ss:$24 sps:$4 sm:$0xff]   ;;  %v2477_v25 = vld [vmem:[#allocation4 + $0x6c] ss:$24 sps:$4 sm:$0xff]  }
 0x17c   :  { %1198 = vmatprep.mubr.bf16.mxu0 %v592_v31  ;;  %1279 = vmatprep.mubr.bf16.mxu1 %v592_v31  ;;  %v538_v38 = vpop.f32.mrb[7].mxu0  ;;  %v579_v39 = vpop.f32.mrb[7].mxu1  ;;  %v2483_v31 = vld [vmem:[#allocation4 + $0x9c] ss:$24 sps:$4 sm:$0xff]   ;;  %v2491_v34 = vld [vmem:[#allocation4 + $0xd0] ss:$24 sps:$4 sm:$0xff]  }
 0x17d   :  { %1168 = vmatprep.subr.bf16.mxu0 %v2429_v29  ;;  %2262 = vmatprep.subr.bf16.mxu1 %v2430_v30  ;;  %v586_v14 = vmax.f32 %v536_v7, 0.0  ;;  %v2485_v29 = vld [vmem:[#allocation4 + $0xa0] ss:$24 sps:$4 sm:$0xff]   ;;  %v2480_v30 = vld [vmem:[#allocation4 + $0x510] ss:$24 sps:$4 sm:$0xff]  }
 0x17e   :  { %v2488_v32 = vld [vmem:[#allocation4 + $0x544] ss:$24 sps:$4 sm:$0xff]   ;;  %v2486_v35 = vld [vmem:[#allocation4 + $0x540] ss:$24 sps:$4 sm:$0xff]   ;;  %v2492_v39 = vld [vmem:[#allocation4 + $0x570] ss:$24 sps:$4 sm:$0xff]  }
 0x17f   :  { %1169 = vmatpush1.bf16.msra.mxu0 %v2427_v36  ;;  %2263 = vmatpush3.bf16.msra.mxu1 %v2431_v37  ;;  %v2779_v19 = vpack.c.bf16 %v586_v14, %v586_v14  ;;  %v2489_v36 = vld [vmem:[#allocation4 + $0xcc] ss:$24 sps:$4 sm:$0xff]   ;;  %v2497_v38 = vld [vmem:[#allocation4 + $0x100] ss:$24 sps:$4 sm:$0xff]   ;;  %v363_v14 = vsub.s32 7, %v2739_v1 }
 0x180   :  { %1170 = vmatprep.subr.bf16.mxu0 %v2434_v40  ;;  %2264 = vmatprep.subr.bf16.mxu1 %v2435_v41  ;;  %v2494_v37 = vld [vmem:[#allocation4 + $0x574] ss:$24 sps:$4 sm:$0xff]   ;;  %v2500_v41 = vld [vmem:[#allocation4 + $0x5a4] ss:$24 sps:$4 sm:$0xff]  }
 0x181   :  { %v2495_v40 = vld [vmem:[#allocation4 + $0xfc] ss:$24 sps:$4 sm:$0xff]  }
 0x182   :  { %v2524_v61 = vld [vmem:[#allocation4 + $0x74] ss:$24 sps:$4 sm:$0xff]  }
 0x183   :  { %1171 = vmatpush1.bf16.msra.mxu0 %v2432_v42  ;;  %2265 = vmatpush3.bf16.msra.mxu1 %v2436_v43  ;;  %v2503_v42 = vld [vmem:[#allocation4 + $0x130] ss:$24 sps:$4 sm:$0xff]   ;;  %v2498_v43 = vld [vmem:[#allocation4 + $0x5a0] ss:$24 sps:$4 sm:$0xff]   ;;  %v2533_v7 = vld [vmem:[#allocation4 + $0x254] ss:$24 sps:$4 sm:$0xff]  }
 0x184   :  { %1172 = vmatprep.subr.bf16.mxu0 %v2439_v44  ;;  %2266 = vmatprep.subr.bf16.mxu1 %v2440_v45  ;;  %v2501_v44 = vld [vmem:[#allocation4 + $0x12c] ss:$24 sps:$4 sm:$0xff]  }
 0x185   :  { %v2506_v45 = vld [vmem:[#allocation4 + $0x5d4] ss:$24 sps:$4 sm:$0xff]  }
 0x187   :  { %1173 = vmatpush1.bf16.msra.mxu0 %v2437_v46  ;;  %2267 = vmatpush3.bf16.msra.mxu1 %v2441_v47  ;;  %v2509_v46 = vld [vmem:[#allocation4 + $0x160] ss:$24 sps:$4 sm:$0xff]   ;;  %v2504_v47 = vld [vmem:[#allocation4 + $0x5d0] ss:$24 sps:$4 sm:$0xff]  }
 0x188   :  { %1174 = vmatprep.subr.bf16.mxu0 %v2444_v48  ;;  %2268 = vmatprep.subr.bf16.mxu1 %v2445_v49  ;;  %v2507_v48 = vld [vmem:[#allocation4 + $0x15c] ss:$24 sps:$4 sm:$0xff]   ;;  %v2512_v49 = vld [vmem:[#allocation4 + $0x190] ss:$24 sps:$4 sm:$0xff]  }
 0x18b   :  { %1175 = vmatpush1.bf16.msra.mxu0 %v2442_v50  ;;  %2269 = vmatpush3.bf16.msra.mxu1 %v2446_v51  ;;  %v2513_v50 = vld [vmem:[#allocation4 + $0x194] ss:$24 sps:$4 sm:$0xff]  }
 0x18c   :  { %1176 = vmatprep.subr.bf16.mxu0 %v2449_v53  ;;  %2270 = vmatprep.subr.bf16.mxu1 %v2450_v54  ;;  %v2510_v51 = vld [vmem:[#allocation4 + $0x18c] ss:$24 sps:$4 sm:$0xff]   ;;  %v2517_v54 = vld [vmem:[#allocation4 + $0x1c0] ss:$24 sps:$4 sm:$0xff]  }
 0x18d   :  { %v2514_v53 = vld [vmem:[#allocation4 + $0x14] ss:$24 sps:$4 sm:$0xff]  }
 0x18f   :  { %1177 = vmatpush1.bf16.msra.mxu0 %v2447_v56  ;;  %2271 = vmatpush3.bf16.msra.mxu1 %v2451_v57  ;;  %v2515_v56 = vld [vmem:[#allocation4 + $0x1bc] ss:$24 sps:$4 sm:$0xff]  }
 0x190   :  { %1178 = vmatprep.subr.bf16.mxu0 %v2454_v59  ;;  %2272 = vmatprep.subr.bf16.mxu1 %v2455_v60  ;;  %v2519_v57 = vld [vmem:[#allocation4 + $0x44] ss:$24 sps:$4 sm:$0xff]   ;;  %v2523_v59 = vld [vmem:[#allocation4 + $0x1f4] ss:$24 sps:$4 sm:$0xff]  }
 0x191   :  { %v2520_v60 = vld [vmem:[#allocation4 + $0x1ec] ss:$24 sps:$4 sm:$0xff]  }
 0x193   :  { %1179 = vmatpush1.bf16.msra.mxu0 %v2452_v62  ;;  %2273 = vmatpush3.bf16.msra.mxu1 %v2456_v63  ;;  %v2527_v62 = vld [vmem:[#allocation4 + $0x220] ss:$24 sps:$4 sm:$0xff]   ;;  %v2528_v63 = vld [vmem:[#allocation4 + $0x224] ss:$24 sps:$4 sm:$0xff]  }
 0x194   :  { %1180 = vmatprep.subr.bf16.mxu0 %v2459_v5  ;;  %2274 = vmatprep.subr.bf16.mxu1 %v2460_v6  ;;  %v2529_v5 = vld [vmem:[#allocation4 + $0xa4] ss:$24 sps:$4 sm:$0xff]   ;;  %v2532_v6 = vld [vmem:[#allocation4 + $0x250] ss:$24 sps:$4 sm:$0xff]  }
 0x197   :  { %1181 = vmatpush1.bf16.msra.mxu0 %v2457_v8  ;;  %2275 = vmatpush3.bf16.msra.mxu1 %v2461_v9  ;;  %v2530_v8 = vld [vmem:[#allocation4 + $0x24c] ss:$24 sps:$4 sm:$0xff]  }
 0x198   :  { %1182 = vmatprep.subr.bf16.mxu0 %v2464_v12  ;;  %1818 = vmatprep.subr.bf16.mxu1 %v2467_v13  ;;  %v2534_v9 = vld [vmem:[#allocation4 + $0xd4] ss:$24 sps:$4 sm:$0xff]   ;;  %v2537_v12 = vld [vmem:[#allocation4 + $0x280] ss:$24 sps:$4 sm:$0xff]   ;;  %v2538_v13 = vld [vmem:[#allocation4 + $0x284] ss:$24 sps:$4 sm:$0xff]  }
 0x19a   :  { %1280 = vmatmul.mubr.bf16.vlgmr.msra.gmra.mrb[12].mxu1 %v2777_v16 }
 0x19b   :  { %1183 = vmatpush1.bf16.msra.mxu0 %v2462_v15  ;;  %1819 = vmatpush1.bf16.msra.mxu1 %v2465_v10  ;;  %v2535_v15 = vld [vmem:[#allocation4 + $0x27c] ss:$24 sps:$4 sm:$0xff]  }
 0x19c   :  { %1850 = vmatprep.mubr.bf16.mxu1 %v2779_v19  ;;  %1184 = vmatprep.subr.bf16.mxu0 %v2470_v17  ;;  %v2539_v10 = vld [vmem:[#allocation4 + $0x104] ss:$24 sps:$4 sm:$0xff]   ;;  %v2542_v17 = vld [vmem:[#allocation4 + $0x2b0] ss:$24 sps:$4 sm:$0xff]  }
 0x19d   :  { %1820 = vmatprep.subr.bf16.mxu1 %v2473_v18  ;;  %v2543_v18 = vld [vmem:[#allocation4 + $0x2b4] ss:$24 sps:$4 sm:$0xff]  }
 0x19f   :  { %1185 = vmatpush1.bf16.msra.mxu0 %v2468_v20  ;;  %1821 = vmatpush1.bf16.msra.mxu1 %v2471_v21  ;;  %v2540_v20 = vld [vmem:[#allocation4 + $0x2ac] ss:$24 sps:$4 sm:$0xff]  }
 0x1a0   :  { %1186 = vmatprep.subr.bf16.mxu0 %v2476_v22  ;;  %1822 = vmatprep.subr.bf16.mxu1 %v2479_v23  ;;  %v2544_v21 = vld [vmem:[#allocation4 + $0x134] ss:$24 sps:$4 sm:$0xff]   ;;  %v2547_v23 = vld [vmem:[#allocation4 + $0x2e0] ss:$24 sps:$4 sm:$0xff]  }
 0x1a3   :  { %1187 = vmatpush1.bf16.msra.mxu0 %v2474_v24  ;;  %1823 = vmatpush1.bf16.msra.mxu1 %v2477_v25  ;;  %v2548_v24 = vld [vmem:[#allocation4 + $0x2e4] ss:$24 sps:$4 sm:$0xff]  }
 0x1a4   :  { %1188 = vmatprep.subr.bf16.mxu0 %v2482_v26  ;;  %1824 = vmatprep.subr.bf16.mxu1 %v2485_v29  ;;  %v2545_v26 = vld [vmem:[#allocation4 + $0x2dc] ss:$24 sps:$4 sm:$0xff]  }
 0x1a5   :  { %v2549_v29 = vld [vmem:[#allocation4 + $0x164] ss:$24 sps:$4 sm:$0xff]  }
 0x1a7   :  { %1189 = vmatpush1.bf16.msra.mxu0 %v2480_v30  ;;  %1825 = vmatpush1.bf16.msra.mxu1 %v2483_v31  ;;  %v2552_v31 = vld [vmem:[#allocation4 + $0x310] ss:$24 sps:$4 sm:$0xff]  }
 0x1a8   :  { %1190 = vmatprep.subr.bf16.mxu0 %v2488_v32  ;;  %1826 = vmatprep.subr.bf16.mxu1 %v2491_v34  ;;  %v2553_v32 = vld [vmem:[#allocation4 + $0x494] ss:$24 sps:$4 sm:$0xff]  }
 0x1ab   :  { %1191 = vmatpush1.bf16.msra.mxu0 %v2486_v35  ;;  %1827 = vmatpush1.bf16.msra.mxu1 %v2489_v36  ;;  %v2550_v35 = vld [vmem:[#allocation4 + $0x30c] ss:$24 sps:$4 sm:$0xff]  }
 0x1ac   :  { %1192 = vmatprep.subr.bf16.mxu0 %v2494_v37  ;;  %1828 = vmatprep.subr.bf16.mxu1 %v2497_v38  ;;  %v2554_v36 = vld [vmem:[#allocation4 + $0x314] ss:$24 sps:$4 sm:$0xff]   ;;  %v2557_v38 = vld [vmem:[#allocation4 + $0x340] ss:$24 sps:$4 sm:$0xff]  }
 0x1af   :  { %1193 = vmatpush1.bf16.msra.mxu0 %v2492_v39  ;;  %1829 = vmatpush1.bf16.msra.mxu1 %v2495_v40  ;;  %v2555_v39 = vld [vmem:[#allocation4 + $0x33c] ss:$24 sps:$4 sm:$0xff]  }
 0x1b0   :  { %1194 = vmatprep.subr.bf16.mxu0 %v2500_v41  ;;  %1830 = vmatprep.subr.bf16.mxu1 %v2503_v42  ;;  %v2559_v40 = vld [vmem:[#allocation4 + $0x344] ss:$24 sps:$4 sm:$0xff]   ;;  %v2562_v41 = vld [vmem:[#allocation4 + $0x370] ss:$24 sps:$4 sm:$0xff]   ;;  %v2563_v42 = vld [vmem:[#allocation4 + $0x4f4] ss:$24 sps:$4 sm:$0xff]  }
 0x1b3   :  { %1195 = vmatpush1.bf16.msra.mxu0 %v2498_v43  ;;  %1831 = vmatpush1.bf16.msra.mxu1 %v2501_v44  ;;  %v2560_v43 = vld [vmem:[#allocation4 + $0x36c] ss:$24 sps:$4 sm:$0xff]  }
 0x1b4   :  { %1196 = vmatprep.subr.bf16.mxu0 %v2506_v45  ;;  %1832 = vmatprep.subr.bf16.mxu1 %v2509_v46  ;;  %v2564_v44 = vld [vmem:[#allocation4 + $0x374] ss:$24 sps:$4 sm:$0xff]   ;;  %v2567_v45 = vld [vmem:[#allocation4 + $0x3a0] ss:$24 sps:$4 sm:$0xff]   ;;  %v2568_v46 = vld [vmem:[#allocation4 + $0x524] ss:$24 sps:$4 sm:$0xff]  }
 0x1b7   :  { %1197 = vmatpush1.bf16.msra.mxu0 %v2504_v47  ;;  %1833 = vmatpush1.bf16.msra.mxu1 %v2507_v48  ;;  %v2565_v47 = vld [vmem:[#allocation4 + $0x39c] ss:$24 sps:$4 sm:$0xff]  }
 0x1b8   :  { %1834 = vmatprep.subr.bf16.mxu1 %v2512_v49  ;;  %2282 = vmatprep.subr.bf16.mxu0 %v2513_v50  ;;  %v2569_v48 = vld [vmem:[#allocation4 + $0x3a4] ss:$24 sps:$4 sm:$0xff]   ;;  %v2572_v49 = vld [vmem:[#allocation4 + $0x3d0] ss:$24 sps:$4 sm:$0xff]   ;;  %v2573_v50 = vld [vmem:[#allocation4 + $0x554] ss:$24 sps:$4 sm:$0xff]  }
 0x1ba   :  { %1199 = vmatmul.mubr.bf16.vlgmr.msra.gmra.mrb[8].mxu0 %v2777_v16  ;;  %v352_v16 = vrot.slane %v2747_v3, %v351_v11  ;;  %v2595_v11 = vld [vmem:[#allocation4 + $0x4c0] ss:$24 sps:$4 sm:$0xff]  }
 0x1bb   :  { %1835 = vmatpush1.bf16.msra.mxu1 %v2510_v51  ;;  %2283 = vmatpush3.bf16.msra.mxu0 %v2514_v53  ;;  %v2570_v51 = vld [vmem:[#allocation4 + $0x3cc] ss:$24 sps:$4 sm:$0xff]  }
 0x1bc   :  { %1932 = vmatprep.mubr.bf16.mxu0 %v2779_v19  ;;  %1836 = vmatprep.subr.bf16.mxu1 %v2517_v54  ;;  %v364_v19 = vrot.slane %v2747_v3, %v363_v14  ;;  %v534_v22 = vadd.f32 %v2760_v27, %v352_v16  ;;  %v2574_v53 = vld [vmem:[#allocation4 + $0x3d4] ss:$24 sps:$4 sm:$0xff]   ;;  %v2577_v54 = vld [vmem:[#allocation4 + $0x400] ss:$24 sps:$4 sm:$0xff]   ;;  %v2604_v16 = vld [vmem:[#allocation4 + $0x550] ss:$24 sps:$4 sm:$0xff]  }
 0x1bd   :  { %2284 = vmatprep.subr.bf16.mxu0 %v2518_v55  ;;  %v359_v55 = vsub.s32 6, %v2739_v1  ;;  %v2596_v14 = vld [vmem:[#allocation4 + $0x4ec] ss:$24 sps:$4 sm:$0xff]  }
 0x1be   :  { %v577_v25 = vadd.f32 %v2766_v33, %v364_v19  ;;  %v585_v30 = vmax.f32 %v534_v22, 0.0  ;;  %v2558_v33 = vld [vmem:[#allocation4 + $0x4c4] ss:$24 sps:$4 sm:$0xff]   ;;  %v2613_v22 = vld [vmem:[#allocation4 + $0x5e0] ss:$24 sps:$4 sm:$0xff]  }
 0x1bf   :  { %1837 = vmatpush1.bf16.msra.mxu1 %v2515_v56  ;;  %2285 = vmatpush3.bf16.msra.mxu0 %v2519_v57  ;;  %v2578_v56 = vld [vmem:[#allocation4 + $0x584] ss:$24 sps:$4 sm:$0xff]  }
 0x1c0   :  { %1838 = vmatprep.subr.bf16.mxu1 %v2522_v58  ;;  %2286 = vmatprep.subr.bf16.mxu0 %v2523_v59  ;;  %v588_v34 = vmax.f32 %v577_v25, 0.0  ;;  %v593_v27 = vpack.c.bf16 %v585_v30, %v585_v30  ;;  %v2575_v57 = vld [vmem:[#allocation4 + $0x3fc] ss:$24 sps:$4 sm:$0xff]   ;;  %v2582_v59 = vld [vmem:[#allocation4 + $0x430] ss:$24 sps:$4 sm:$0xff]  }
 0x1c1   :  { %v2579_v58 = vld [vmem:[#allocation4 + $0x404] ss:$24 sps:$4 sm:$0xff]  }
 0x1c2   :  { %v596_v37 = vpack.c.bf16 %v588_v34, %v588_v34  ;;  %v2605_v19 = vld [vmem:[#allocation4 + $0x57c] ss:$24 sps:$4 sm:$0xff]  }
 0x1c3   :  { %1839 = vmatpush1.bf16.msra.mxu1 %v2520_v60  ;;  %2287 = vmatpush3.bf16.msra.mxu0 %v2524_v61  ;;  %v360_v60 = vrot.slane %v2747_v3, %v359_v55  ;;  %v2583_v61 = vld [vmem:[#allocation4 + $0x5b4] ss:$24 sps:$4 sm:$0xff]  }
 0x1c4   :  { %1840 = vmatprep.subr.bf16.mxu1 %v2527_v62  ;;  %2288 = vmatprep.subr.bf16.mxu0 %v2528_v63  ;;  %v2580_v62 = vld [vmem:[#allocation4 + $0x42c] ss:$24 sps:$4 sm:$0xff]  }
 0x1c5   :  { %v2584_v63 = vld [vmem:[#allocation4 + $0x434] ss:$24 sps:$4 sm:$0xff]   ;;  %v575_v1 = vadd.f32 %v2762_v28, %v360_v60  ;;  %v2598_v28 = vld [vmem:[#allocation4 + $0x4f0] ss:$24 sps:$4 sm:$0xff]  }
 0x1c6   :  { %v2590_v3 = vld [vmem:[#allocation4 + $0x48c] ss:$24 sps:$4 sm:$0xff]  }
 0x1c7   :  { %1841 = vmatpush1.bf16.msra.mxu1 %v2525_v0  ;;  %2289 = vmatpush3.bf16.msra.mxu0 %v2529_v5  ;;  %v2587_v0 = vld [vmem:[#allocation4 + $0x460] ss:$24 sps:$4 sm:$0xff]   ;;  %v2588_v5 = vld [vmem:[#allocation4 + $0x5e4] ss:$24 sps:$4 sm:$0xff]  }
 0x1c8   :  { %1842 = vmatprep.subr.bf16.mxu1 %v2532_v6  ;;  %2290 = vmatprep.subr.bf16.mxu0 %v2533_v7  ;;  %v2585_v6 = vld [vmem:[#allocation4 + $0x45c] ss:$24 sps:$4 sm:$0xff]  }
 0x1c9   :  { %v2589_v7 = vld [vmem:[#allocation4 + $0x464] ss:$24 sps:$4 sm:$0xff]  }
 0x1cb   :  { %1843 = vmatpush1.bf16.msra.mxu1 %v2530_v8  ;;  %2291 = vmatpush3.bf16.msra.mxu0 %v2534_v9  ;;  %v2592_v8 = vld [vmem:[#allocation4 + $0x490] ss:$24 sps:$4 sm:$0xff]   ;;  %v587_v9 = vmax.f32 %v575_v1, 0.0 }
 0x1cc   :  { %1844 = vmatprep.subr.bf16.mxu1 %v2537_v12  ;;  %2292 = vmatprep.subr.bf16.mxu0 %v2538_v13  ;;  %v2593_v13 = vld [vmem:[#allocation4 + $0x4bc] ss:$24 sps:$4 sm:$0xff]  }
 0x1cd   :  { %v595_v12 = vpack.c.bf16 %v587_v9, %v587_v9 }
 0x1cf   :  { %1845 = vmatpush1.bf16.msra.mxu1 %v2535_v15  ;;  %2293 = vmatpush3.bf16.msra.mxu0 %v2539_v10  ;;  %v2601_v15 = vld [vmem:[#allocation4 + $0x520] ss:$24 sps:$4 sm:$0xff]   ;;  %v2599_v10 = vld [vmem:[#allocation4 + $0x51c] ss:$24 sps:$4 sm:$0xff]  }
 0x1d0   :  { %1846 = vmatprep.subr.bf16.mxu1 %v2542_v17  ;;  %2294 = vmatprep.subr.bf16.mxu0 %v2543_v18  ;;  %v2602_v17 = vld [vmem:[#allocation4 + $0x54c] ss:$24 sps:$4 sm:$0xff]   ;;  %v2607_v18 = vld [vmem:[#allocation4 + $0x580] ss:$24 sps:$4 sm:$0xff]  }
 0x1d3   :  { %1847 = vmatpush1.bf16.msra.mxu1 %v2540_v20  ;;  %2295 = vmatpush3.bf16.msra.mxu0 %v2544_v21  ;;  %v2610_v20 = vld [vmem:[#allocation4 + $0x5b0] ss:$24 sps:$4 sm:$0xff]   ;;  %v2608_v21 = vld [vmem:[#allocation4 + $0x5ac] ss:$24 sps:$4 sm:$0xff]  }
 0x1d4   :  { %1848 = vmatprep.subr.bf16.mxu1 %v2547_v23  ;;  %2296 = vmatprep.subr.bf16.mxu0 %v2548_v24  ;;  %v2611_v23 = vld [vmem:[#allocation4 + $0x5dc] ss:$24 sps:$4 sm:$0xff]  }
 0x1d7   :  { %1849 = vmatpush1.bf16.msra.mxu1 %v2545_v26  ;;  %2297 = vmatpush3.bf16.msra.mxu0 %v2549_v29 }
 0x1d8   :  { %1859 = vmatprep.subr.bf16.mxu1 %v2552_v31  ;;  %2304 = vmatprep.subr.bf16.mxu0 %v2553_v32  ;;  %v330_v31 = vld [vmem:[%s2822_s4 + $0x8] sm:$0x7] }
 0x1d9   :  { %v609_v32 = vrot.slane %v330_v31, %v2769_v52 }
 0x1da   :  { %1851 = vmatmul.mubr.bf16.vlgmr.msra.gmra.mrb[16].mxu1 %v593_v27  ;;  %1933 = vmatmul.mubr.bf16.vlgmr.msra.gmra.mrb[12].mxu0 %v593_v27 }
 0x1db   :  { %1860 = vmatpush1.bf16.msra.mxu1 %v2550_v35  ;;  %1891 = vmatprep.mubr.bf16.mxu1 %v596_v37 }
 0x1dc   :  { %2305 = vmatpush3.bf16.msra.mxu0 %v2554_v36  ;;  %1972 = vmatprep.mubr.bf16.mxu0 %v596_v37 }
 0x1dd   :  { %1861 = vmatprep.subr.bf16.mxu1 %v2557_v38  ;;  %2306 = vmatprep.subr.bf16.mxu0 %v2558_v33 }
 0x1df   :  { %1862 = vmatpush1.bf16.msra.mxu1 %v2555_v39  ;;  %v68_v39 = vld [vmem:[#allocation2 + $0x20] sm:$0xff] }
 0x1e0   :  { %2307 = vmatpush3.bf16.msra.mxu0 %v2559_v40  ;;  %1863 = vmatprep.subr.bf16.mxu1 %v2562_v41  ;;  %v70_v40 = vunpack.c.l.bf16 %v68_v39  ;;  %v601_v41 = vrot.slane %v330_v31, %v2742_v2 }
 0x1e1   :  { %2308 = vmatprep.subr.bf16.mxu0 %v2563_v42  ;;  %v69_v42 = vld [vmem:[#allocation2 + $0x28] sm:$0xf] }
 0x1e3   :  { %1864 = vmatpush1.bf16.msra.mxu1 %v2560_v43  ;;  %v71_v43 = vunpack.c.h.bf16 %v68_v39 }
 0x1e4   :  { %2309 = vmatpush3.bf16.msra.mxu0 %v2564_v44  ;;  %1865 = vmatprep.subr.bf16.mxu1 %v2567_v45  ;;  %v605_v44 = vrot.slane %v330_v31, %v2750_v4 }
 0x1e5   :  { %2310 = vmatprep.subr.bf16.mxu0 %v2568_v46  ;;  %v72_v46 = vunpack.c.l.bf16 %v69_v42 }
 0x1e7   :  { %1866 = vmatpush1.bf16.msra.mxu1 %v2565_v47 }
 0x1e8   :  { %2311 = vmatpush3.bf16.msra.mxu0 %v2569_v48  ;;  %1867 = vmatprep.subr.bf16.mxu1 %v2572_v49  ;;  %v1986_v48 = vrot.slane %v70_v40, %v2742_v2 }
 0x1e9   :  { %2312 = vmatprep.subr.bf16.mxu0 %v2573_v50 }
 0x1eb   :  { %1868 = vmatpush1.bf16.msra.mxu1 %v2570_v51  ;;  %v1990_v51 = vrot.slane %v71_v43, %v2742_v2 }
 0x1ec   :  { %2313 = vmatpush3.bf16.msra.mxu0 %v2574_v53  ;;  %1869 = vmatprep.subr.bf16.mxu1 %v2577_v54 }
 0x1ed   :  { %2314 = vmatprep.subr.bf16.mxu0 %v2578_v56 }
 0x1ef   :  { %1870 = vmatpush1.bf16.msra.mxu1 %v2575_v57 }
 0x1f0   :  { %2315 = vmatpush3.bf16.msra.mxu0 %v2579_v58  ;;  %1871 = vmatprep.subr.bf16.mxu1 %v2582_v59  ;;  %v1994_v58 = vrot.slane %v72_v46, %v2742_v2 }
 0x1f1   :  { %2316 = vmatprep.subr.bf16.mxu0 %v2583_v61 }
 0x1f3   :  { %1872 = vmatpush1.bf16.msra.mxu1 %v2580_v62 }
 0x1f4   :  { %2317 = vmatpush3.bf16.msra.mxu0 %v2584_v63  ;;  %1873 = vmatprep.subr.bf16.mxu1 %v2587_v0 }
 0x1f5   :  { %2318 = vmatprep.subr.bf16.mxu0 %v2588_v5 }
 0x1f7   :  { %1874 = vmatpush1.bf16.msra.mxu1 %v2585_v6 }
 0x1f8   :  { %2319 = vmatpush3.bf16.msra.mxu0 %v2589_v7  ;;  %1875 = vmatprep.subr.bf16.mxu1 %v2592_v8  ;;  %v331_v8 = vld [vmem:[%s2822_s4 + $0xb] sm:$0x7] }
 0x1f9   :  { %v1302_v9 = vrot.slane %v331_v8, %v2769_v52 }
 0x1fb   :  { %1973 = vmatmul.mubr.bf16.vlgmr.msra.gmra.mrb[16].mxu0 %v595_v12  ;;  %1876 = vmatpush1.bf16.msra.mxu1 %v2590_v3 }
 0x1fc   :  { %1877 = vmatprep.subr.bf16.mxu1 %v2595_v11 }
 0x1ff   :  { %1878 = vmatpush1.bf16.msra.mxu1 %v2593_v13 }
 0x200   :  { %1879 = vmatprep.subr.bf16.mxu1 %v2598_v28 }
 0x203   :  { %1880 = vmatpush1.bf16.msra.mxu1 %v2596_v14 }
 0x204   :  { %1881 = vmatprep.subr.bf16.mxu1 %v2601_v15 }
 0x207   :  { %1882 = vmatpush1.bf16.msra.mxu1 %v2599_v10  ;;  %v1294_v10 = vrot.slane %v331_v8, %v2742_v2 }
 0x208   :  { %1883 = vmatprep.subr.bf16.mxu1 %v2604_v16  ;;  %v1298_v16 = vrot.slane %v331_v8, %v2750_v4 }
 0x20b   :  { %1884 = vmatpush1.bf16.msra.mxu1 %v2602_v17 }
 0x20c   :  { %1885 = vmatprep.subr.bf16.mxu1 %v2607_v18 }
 0x20f   :  { %1886 = vmatpush1.bf16.msra.mxu1 %v2605_v19  ;;  %v2007_v19 = vrot.slane %v70_v40, %v2750_v4 }
 0x210   :  { %1887 = vmatprep.subr.bf16.mxu1 %v2610_v20 }
 0x213   :  { %1888 = vmatpush1.bf16.msra.mxu1 %v2608_v21 }
 0x214   :  { %1889 = vmatprep.subr.bf16.mxu1 %v2613_v22  ;;  %v2011_v22 = vrot.slane %v71_v43, %v2750_v4 }
 0x217   :  { %1890 = vmatpush1.bf16.msra.mxu1 %v2611_v23 }
 0x21a   :  { %1892 = vmatmul.mubr.bf16.vlgmr.msra.gmra.mrb[16].mxu1 %v595_v12 }
 0x24d   :  { %v2254_v24 = vpop.f32.mrb[8].mxu1 }
 0x24e   :  { %v2255_v25 = vpop.f32.mrb[9].mxu1 }
 0x24f   :  { %v2256_v26 = vadd.f32 %v2255_v25, %v2254_v24  ;;  %v2257_v29 = vpop.f32.mrb[10].mxu1 }
 0x250   :  { %v2258_v30 = vpop.f32.mrb[11].mxu1  ;;  %v2015_v29 = vrot.slane %v72_v46, %v2750_v4 }
 0x251   :  { %v1242_v27 = vadd.f32 %v2256_v26, %v609_v32 }
 0x26d   :  { %v2276_v34 = vpop.f32.mrb[12].mxu1 }
 0x26e   :  { %v2277_v35 = vpop.f32.mrb[13].mxu1 }
 0x26f   :  { %v2278_v36 = vadd.f32 %v2277_v35, %v2276_v34  ;;  %v2279_v37 = vpop.f32.mrb[14].mxu1 }
 0x270   :  { %v2280_v38 = vpop.f32.mrb[15].mxu1 }
 0x271   :  { %v1282_v33 = vadd.f32 %v2278_v36, %v1242_v27 }
 0x273   :  { %v1289_v56 = vmax.f32 %v1282_v33, 0.0 }
 0x275   :  { %v1997_v61 = vmul.f32 %v1994_v58, %v1289_v56 }
 0x28d   :  { %v1200_v45 = vpop.f32.mrb[8].mxu0 }
 0x28e   :  { %v2326_v47 = vadd.f32 %v1200_v45, %v601_v41  ;;  %v1202_v49 = vpop.f32.mrb[9].mxu0 }
 0x28f   :  { %v2327_v50 = vadd.f32 %v1202_v49, %v605_v44  ;;  %v1204_v53 = vpop.f32.mrb[10].mxu0 }
 0x290   :  { %v1287_v54 = vmax.f32 %v2326_v47, 0.0  ;;  %v1205_v55 = vpop.f32.mrb[11].mxu0 }
 0x291   :  { %v1288_v57 = vmax.f32 %v2327_v50, 0.0 }
 0x292   :  { %v1995_v59 = vmul.f32 %v1986_v48, %v1287_v54 }
 0x293   :  { %v1996_v60 = vmul.f32 %v1990_v51, %v1288_v57 }
 0x295   :  { %v1998_v62 = vadd.f32 %v1996_v60, %v1995_v59 }
 0x297   :  { %v1999_v63 = vadd.f32 %v1998_v62, %v1997_v61 }
 0x299   :  { %2000 = vadd.xlane.f32.xlu0 %v1999_v63 }
 0x2ad   :  { %v2298_v0 = vpop.f32.mrb[12].mxu0 }
 0x2ae   :  { %v2299_v1 = vpop.f32.mrb[13].mxu0 }
 0x2af   :  { %v2300_v5 = vadd.f32 %v2299_v1, %v2298_v0  ;;  %v2301_v6 = vpop.f32.mrb[14].mxu0 }
 0x2b0   :  { %v2302_v7 = vpop.f32.mrb[15].mxu0 }
 0x2b1   :  { %v1935_v12 = vadd.f32 %v2300_v5, %v1302_v9 }
 0x2ce   :  { %v2320_v3 = vpop.f32.mrb[16].mxu0 }
 0x2cf   :  { %v2321_v11 = vpop.f32.mrb[17].mxu0 }
 0x2d0   :  { %v2322_v13 = vadd.f32 %v2321_v11, %v2320_v3  ;;  %v2323_v28 = vpop.f32.mrb[18].mxu0 }
 0x2d1   :  { %v2324_v14 = vpop.f32.mrb[19].mxu0 }
 0x2d2   :  { %v1975_v15 = vadd.f32 %v2322_v13, %v1935_v12 }
 0x2d4   :  { %v1982_v25 = vmax.f32 %v1975_v15, 0.0 }
 0x2d6   :  { %v2018_v2 = vmul.f32 %v2015_v29, %v1982_v25 }
 0x2ed   :  { %v1893_v17 = vpop.f32.mrb[16].mxu1 }
 0x2ee   :  { %v2328_v18 = vadd.f32 %v1893_v17, %v1294_v10  ;;  %v1895_v20 = vpop.f32.mrb[17].mxu1 }
 0x2ef   :  { %v2329_v21 = vadd.f32 %v1895_v20, %v1298_v16  ;;  %v1897_v52 = vpop.f32.mrb[18].mxu1 }
 0x2f0   :  { %v1980_v23 = vmax.f32 %v2328_v18, 0.0  ;;  %v1898_v24 = vpop.f32.mrb[19].mxu1 }
 0x2f1   :  { %v1981_v26 = vmax.f32 %v2329_v21, 0.0 }
 0x2f2   :  { %v2016_v30 = vmul.f32 %v2007_v19, %v1980_v23 }
 0x2f3   :  { %v2017_v31 = vmul.f32 %v2011_v22, %v1981_v26 }
 0x2f5   :  { %v2019_v32 = vadd.f32 %v2017_v31, %v2016_v30 }
 0x2f7   :  { %v2020_v34 = vadd.f32 %v2019_v32, %v2018_v2 }
 0x2f9   :  { %2021 = vadd.xlane.f32.xlu1 %v2020_v34 }
 0x326   :  { %v2001_v35 = vpop.xlane.xlu0 %2000 }
 0x327   :  { %2003 = vst.msk [vmem:[%s2823_s5] sm:$0xff] %vm2002_vm2, %v2001_v35 }
 0x386   :  { %v2022_v27 = vpop.xlane.xlu1 %2021 }
 0x387   :  { %2023 = vst.msk [vmem:[%s2824_s6] sm:$0xff] %vm2002_vm2, %v2022_v27 }
 0x388   :  { %2032 = vsyncpa [#allocation3], 1 }
 0x389   :  { %2033 = vsyncpa [#allocation5], 1 }

</bundles_post_ra>
